<compile_context>
chip_gen: v7x
topology: tpu7x:2x2x1
jax: 0.10.0
libtpu: 0.0.40
codegen_flags: <defaults>
</compile_context>

<pallas_src>
import numpy as np
import jax
import jax.numpy as jnp
from jax.experimental import pallas as pl
from jax.experimental.pallas import tpu as pltpu


# ---------------------------------------------------------------------------
# helpers
# ---------------------------------------------------------------------------
def _pick_row_tile(dim, target=256):
    """Largest row tile: the full dim if small, else the biggest multiple-of-8
    divisor of `dim` that is <= target (second-minor block dim must be a
    multiple of 8 or the full dim)."""
    if dim <= target:
        return dim
    t = target - (target % 8)
    while t >= 8:
        if dim % t == 0:
            return t
        t -= 8
    return dim  # full dim is always legal


def _fwd_pair_matrices(w):
    """Column pair-sum / pair-diff matrices (with the /4 folded in)."""
    w2 = w // 2
    j = np.arange(w2)
    ps = np.zeros((w, w2), np.float32)
    pd = np.zeros((w, w2), np.float32)
    ps[2 * j, j] = 0.25
    ps[2 * j + 1, j] = 0.25
    pd[2 * j, j] = 0.25
    pd[2 * j + 1, j] = -0.25
    return jnp.asarray(ps), jnp.asarray(pd)


def _rev_pair_matrices(w2):
    """Column interleave matrices for the inverse transform (entries +-1)."""
    w = 2 * w2
    j = np.arange(w2)
    ea = np.zeros((w2, w), np.float32)
    eb = np.zeros((w2, w), np.float32)
    ea[j, 2 * j] = 1.0
    ea[j, 2 * j + 1] = 1.0
    eb[j, 2 * j] = 1.0
    eb[j, 2 * j + 1] = -1.0
    return jnp.asarray(ea), jnp.asarray(eb)


def haar_last_jac(x_shape, rev=False):
    """The module's self.last_jac bookkeeping (host-side scalar)."""
    _, c, h, w = x_shape
    elements = c * h * w
    return elements / 4 * (np.log(16.0) if rev else np.log(1.0 / 16.0))


# ---------------------------------------------------------------------------
# kernels
# ---------------------------------------------------------------------------
def _haar_fwd_kernel(x_ref, psum_ref, pdiff_ref, o_ref):
    # x_ref:     (th, 2W)     merged row pair: [row 2i | row 2i+1]
    # psum_ref:  (W, W//2)    column pair-sum  * 0.25
    # pdiff_ref: (W, W//2)    column pair-diff * 0.25
    # o_ref:     (4, th, W//2) the four Haar subbands for this tile
    w = psum_ref.shape[0]
    even = x_ref[:, pl.ds(0, w)]           # rows 2i
    odd = x_ref[:, pl.ds(w, w)]            # rows 2i+1
    rs = even + odd                        # (a+c | b+d) interleaved along lanes
    rd = even - odd                        # (a-c | b-d)
    ps = psum_ref[...]
    pd = pdiff_ref[...]
    o_ref[0] = jnp.dot(rs, ps, preferred_element_type=jnp.float32).astype(o_ref.dtype)
    o_ref[1] = jnp.dot(rs, pd, preferred_element_type=jnp.float32).astype(o_ref.dtype)
    o_ref[2] = jnp.dot(rd, ps, preferred_element_type=jnp.float32).astype(o_ref.dtype)
    o_ref[3] = jnp.dot(rd, pd, preferred_element_type=jnp.float32).astype(o_ref.dtype)


def _haar_rev_kernel(x_ref, ea_ref, eb_ref, o_ref):
    # x_ref: (4, th, W2) subbands;  ea/eb: (W2, 2*W2) interleaving matrices
    # o_ref: (th, 4*W2)  merged output row pair [row 2i | row 2i+1]
    w = ea_ref.shape[1]                    # output width = 2*W2
    o0 = x_ref[0]
    o1 = x_ref[1]
    o2 = x_ref[2]
    o3 = x_ref[3]
    s02 = o0 + o2
    s13 = o1 + o3
    d02 = o0 - o2
    d13 = o1 - o3
    ea = ea_ref[...]
    eb = eb_ref[...]
    even = (jnp.dot(s02, ea, preferred_element_type=jnp.float32)
            + jnp.dot(s13, eb, preferred_element_type=jnp.float32))
    odd = (jnp.dot(d02, ea, preferred_element_type=jnp.float32)
           + jnp.dot(d13, eb, preferred_element_type=jnp.float32))
    o_ref[:, pl.ds(0, w)] = even.astype(o_ref.dtype)
    o_ref[:, pl.ds(w, w)] = odd.astype(o_ref.dtype)


# ---------------------------------------------------------------------------
# wrapper
# ---------------------------------------------------------------------------
def haar_downsampling(x, channel_in, rev=False, *, max_row_tile=256):
    """Pallas TPU implementation of HaarDownsampling.forward."""
    if not rev:
        n, c, h, w = x.shape
        assert c == channel_in and h % 2 == 0 and w % 2 == 0
        h2, w2 = h // 2, w // 2
        xr = x.reshape(n, c, h2, 2 * w)                    # free reshape (row-pair merge)
        ps, pd = _fwd_pair_matrices(w)
        th = _pick_row_tile(h2, max_row_tile)
        grid = (n, c, h2 // th)
        out5 = pl.pallas_call(
            _haar_fwd_kernel,
            out_shape=jax.ShapeDtypeStruct((n, 4, c, h2, w2), x.dtype),
            grid_spec=pltpu.PrefetchScalarGridSpec(
                num_scalar_prefetch=0,
                grid=grid,
                in_specs=[
                    pl.BlockSpec((None, None, th, 2 * w),
                                 lambda b, ch, r: (b, ch, r, 0)),
                    pl.BlockSpec((w, w2), lambda b, ch, r: (0, 0)),
                    pl.BlockSpec((w, w2), lambda b, ch, r: (0, 0)),
                ],
                out_specs=pl.BlockSpec((None, 4, None, th, w2),
                                       lambda b, ch, r: (b, 0, ch, r, 0)),
            ),
            compiler_params=pltpu.CompilerParams(
                dimension_semantics=("parallel", "parallel", "parallel")),
        )(xr, ps, pd)
        return out5.reshape(n, 4 * c, h2, w2)              # free reshape (f*C + c order)
    else:
        n, c4, h2, w2 = x.shape
        c = channel_in
        assert c4 == 4 * c
        w = 2 * w2
        x5 = x.reshape(n, 4, c, h2, w2)                    # free reshape
        ea, eb = _rev_pair_matrices(w2)
        th = _pick_row_tile(h2, max_row_tile)
        grid = (n, c, h2 // th)
        outm = pl.pallas_call(
            _haar_rev_kernel,
            out_shape=jax.ShapeDtypeStruct((n, c, h2, 2 * w), x.dtype),
            grid_spec=pltpu.PrefetchScalarGridSpec(
                num_scalar_prefetch=0,
                grid=grid,
                in_specs=[
                    pl.BlockSpec((None, 4, None, th, w2),
                                 lambda b, ch, r: (b, 0, ch, r, 0)),
                    pl.BlockSpec((w2, w), lambda b, ch, r: (0, 0)),
                    pl.BlockSpec((w2, w), lambda b, ch, r: (0, 0)),
                ],
                out_specs=pl.BlockSpec((None, None, th, 2 * w),
                                       lambda b, ch, r: (b, ch, r, 0)),
            ),
            compiler_params=pltpu.CompilerParams(
                dimension_semantics=("parallel", "parallel", "parallel")),
        )(x5, ea, eb)
        return outm.reshape(n, c, 2 * h2, w)               # free reshape (row-pair split)


# ---------------------------------------------------------------------------
# pure-JAX reference matching the PyTorch module
# ---------------------------------------------------------------------------
def _reference(x, channel_in, rev=False):
    if not rev:
        n, c, h, w = x.shape
        a = x[:, :, 0::2, 0::2]
        b = x[:, :, 0::2, 1::2]
        cc = x[:, :, 1::2, 0::2]
        d = x[:, :, 1::2, 1::2]
        o0 = (a + b + cc + d) * 0.25
        o1 = (a - b + cc - d) * 0.25
        o2 = (a + b - cc - d) * 0.25
        o3 = (a - b - cc + d) * 0.25
        out = jnp.stack([o0, o1, o2, o3], axis=1)          # (N, 4, C, H/2, W/2)
        return out.reshape(n, 4 * c, h // 2, w // 2)
    else:
        n, c4, h2, w2 = x.shape
        c = channel_in
        o = x.reshape(n, 4, c, h2, w2)
        o0, o1, o2, o3 = o[:, 0], o[:, 1], o[:, 2], o[:, 3]
        a = o0 + o1 + o2 + o3
        b = o0 - o1 + o2 - o3
        cc = o0 + o1 - o2 - o3
        d = o0 - o1 - o2 + o3
        y = jnp.zeros((n, c, 2 * h2, 2 * w2), x.dtype)
        y = y.at[:, :, 0::2, 0::2].set(a)
        y = y.at[:, :, 0::2, 1::2].set(b)
        y = y.at[:, :, 1::2, 0::2].set(cc)
        y = y.at[:, :, 1::2, 1::2].set(d)
        return y


if __name__ == "__main__":
    key = jax.random.PRNGKey(0)
    N, C, H, W = 2, 4, 16, 16

    # Quantize inputs to multiples of 1/8 so every intermediate is exactly
    # representable regardless of MXU pass precision -> tight tolerances.
    x = jnp.round(jax.random.normal(key, (N, C, H, W), jnp.float32) * 8.0) / 8.0

    fwd = jax.jit(lambda t: haar_downsampling(t, C, rev=False))
    rev = jax.jit(lambda t: haar_downsampling(t, C, rev=True))

    # forward
    y = jax.block_until_ready(fwd(x))
    y_ref = _reference(x, C, rev=False)
    np.testing.assert_allclose(np.asarray(y), np.asarray(y_ref), rtol=1e-6, atol=1e-6)
    assert y.shape == (N, 4 * C, H // 2, W // 2)

    # inverse against the reference
    x_rec = jax.block_until_ready(rev(y))
    x_rec_ref = _reference(y_ref, C, rev=True)
    np.testing.assert_allclose(np.asarray(x_rec), np.asarray(x_rec_ref), rtol=1e-6, atol=1e-6)

    # round trip recovers the input exactly (Haar transform is orthogonal)
    np.testing.assert_allclose(np.asarray(x_rec), np.asarray(x), rtol=1e-6, atol=1e-6)

    print("KERNEL_OK")
</pallas_src>

<mosaic_0001>
module attributes {stable_mosaic.version = 11 : i64} {
  func.func @_haar_fwd_kernel(%arg0: i32, %arg1: i32, %arg2: i32, %arg3: memref<1x1x8x32xf32, #tpu.memory_space<vmem>>, %arg4: memref<16x8xf32, #tpu.memory_space<vmem>>, %arg5: memref<16x8xf32, #tpu.memory_space<vmem>>, %arg6: memref<1x4x1x8x8xf32, #tpu.memory_space<vmem>>) attributes {dimension_semantics = [#tpu.dimension_semantics<parallel>, #tpu.dimension_semantics<parallel>, #tpu.dimension_semantics<parallel>], iteration_bounds = array<i64: 2, 4, 1>, scalar_prefetch = 0 : i64, scratch_operands = 0 : i64, tpu.core_type = #tpu.core_type<tc>, window_params = [{transform_indices = @transform_0, window_bounds = array<i64: 1, 1, 8, 32>}, {pipeline_mode = #tpu.pipeline_mode<synchronous>, transform_indices = @transform_1, window_bounds = array<i64: 16, 8>}, {pipeline_mode = #tpu.pipeline_mode<synchronous>, transform_indices = @transform_2, window_bounds = array<i64: 16, 8>}, {transform_indices = @transform_3, window_bounds = array<i64: 1, 4, 1, 8, 8>}]} {
    %c0 = arith.constant 0 : index
    %c0_0 = arith.constant 0 : index
    %c0_1 = arith.constant 0 : index
    %c0_2 = arith.constant 0 : index
    %0 = vector.load %arg3[%c0, %c0_0, %c0_1, %c0_2] : memref<1x1x8x32xf32, #tpu.memory_space<vmem>>, vector<1x1x8x16xf32>
    %1 = vector.shape_cast %0 : vector<1x1x8x16xf32> to vector<8x16xf32>
    %c0_3 = arith.constant 0 : index
    %c0_4 = arith.constant 0 : index
    %c0_5 = arith.constant 0 : index
    %c16 = arith.constant 16 : index
    %2 = vector.load %arg3[%c0_3, %c0_4, %c0_5, %c16] : memref<1x1x8x32xf32, #tpu.memory_space<vmem>>, vector<1x1x8x16xf32>
    %3 = vector.shape_cast %2 : vector<1x1x8x16xf32> to vector<8x16xf32>
    %4 = arith.addf %1, %3 : vector<8x16xf32>
    %5 = arith.subf %1, %3 : vector<8x16xf32>
    %c0_6 = arith.constant 0 : index
    %c0_7 = arith.constant 0 : index
    %6 = vector.load %arg4[%c0_6, %c0_7] : memref<16x8xf32, #tpu.memory_space<vmem>>, vector<16x8xf32>
    %c0_8 = arith.constant 0 : index
    %c0_9 = arith.constant 0 : index
    %7 = vector.load %arg5[%c0_8, %c0_9] : memref<16x8xf32, #tpu.memory_space<vmem>>, vector<16x8xf32>
    %cst = arith.constant dense<0.000000e+00> : vector<8x8xf32>
    %8 = tpu.matmul %4, %6, %cst {dimension_numbers = #tpu.dot_dimension_numbers<[1], [0], [0], [1], [0, 0, 1, 1], [], []>} : vector<8x16xf32>, vector<16x8xf32>, vector<8x8xf32> -> vector<8x8xf32>
    %c0_10 = arith.constant 0 : index
    %c0_11 = arith.constant 0 : index
    %c0_12 = arith.constant 0 : index
    %c0_13 = arith.constant 0 : index
    %c0_14 = arith.constant 0 : index
    %9 = vector.load %arg6[%c0_10, %c0_11, %c0_12, %c0_13, %c0_14] : memref<1x4x1x8x8xf32, #tpu.memory_space<vmem>>, vector<1x1x1x8x8xf32>
    %10 = vector.shape_cast %9 : vector<1x1x1x8x8xf32> to vector<8x8xf32>
    %11 = vector.shape_cast %8 : vector<8x8xf32> to vector<1x1x1x8x8xf32>
    tpu.vector_store %arg6[%c0_10, %c0_11, %c0_12, %c0_13, %c0_14], %11 {strides = array<i32>} : memref<1x4x1x8x8xf32, #tpu.memory_space<vmem>>, vector<1x1x1x8x8xf32>,
    %cst_15 = arith.constant dense<0.000000e+00> : vector<8x8xf32>
    %12 = tpu.matmul %4, %7, %cst_15 {dimension_numbers = #tpu.dot_dimension_numbers<[1], [0], [0], [1], [0, 0, 1, 1], [], []>} : vector<8x16xf32>, vector<16x8xf32>, vector<8x8xf32> -> vector<8x8xf32>
    %c0_16 = arith.constant 0 : index
    %c1 = arith.constant 1 : index
    %c0_17 = arith.constant 0 : index
    %c0_18 = arith.constant 0 : index
    %c0_19 = arith.constant 0 : index
    %13 = vector.load %arg6[%c0_16, %c1, %c0_17, %c0_18, %c0_19] : memref<1x4x1x8x8xf32, #tpu.memory_space<vmem>>, vector<1x1x1x8x8xf32>
    %14 = vector.shape_cast %13 : vector<1x1x1x8x8xf32> to vector<8x8xf32>
    %15 = vector.shape_cast %12 : vector<8x8xf32> to vector<1x1x1x8x8xf32>
    tpu.vector_store %arg6[%c0_16, %c1, %c0_17, %c0_18, %c0_19], %15 {strides = array<i32>} : memref<1x4x1x8x8xf32, #tpu.memory_space<vmem>>, vector<1x1x1x8x8xf32>,
    %cst_20 = arith.constant dense<0.000000e+00> : vector<8x8xf32>
    %16 = tpu.matmul %5, %6, %cst_20 {dimension_numbers = #tpu.dot_dimension_numbers<[1], [0], [0], [1], [0, 0, 1, 1], [], []>} : vector<8x16xf32>, vector<16x8xf32>, vector<8x8xf32> -> vector<8x8xf32>
    %c0_21 = arith.constant 0 : index
    %c2 = arith.constant 2 : index
    %c0_22 = arith.constant 0 : index
    %c0_23 = arith.constant 0 : index
    %c0_24 = arith.constant 0 : index
    %17 = vector.load %arg6[%c0_21, %c2, %c0_22, %c0_23, %c0_24] : memref<1x4x1x8x8xf32, #tpu.memory_space<vmem>>, vector<1x1x1x8x8xf32>
    %18 = vector.shape_cast %17 : vector<1x1x1x8x8xf32> to vector<8x8xf32>
    %19 = vector.shape_cast %16 : vector<8x8xf32> to vector<1x1x1x8x8xf32>
    tpu.vector_store %arg6[%c0_21, %c2, %c0_22, %c0_23, %c0_24], %19 {strides = array<i32>} : memref<1x4x1x8x8xf32, #tpu.memory_space<vmem>>, vector<1x1x1x8x8xf32>,
    %cst_25 = arith.constant dense<0.000000e+00> : vector<8x8xf32>
    %20 = tpu.matmul %5, %7, %cst_25 {dimension_numbers = #tpu.dot_dimension_numbers<[1], [0], [0], [1], [0, 0, 1, 1], [], []>} : vector<8x16xf32>, vector<16x8xf32>, vector<8x8xf32> -> vector<8x8xf32>
    %c0_26 = arith.constant 0 : index
    %c3 = arith.constant 3 : index
    %c0_27 = arith.constant 0 : index
    %c0_28 = arith.constant 0 : index
    %c0_29 = arith.constant 0 : index
    %21 = vector.load %arg6[%c0_26, %c3, %c0_27, %c0_28, %c0_29] : memref<1x4x1x8x8xf32, #tpu.memory_space<vmem>>, vector<1x1x1x8x8xf32>
    %22 = vector.shape_cast %21 : vector<1x1x1x8x8xf32> to vector<8x8xf32>
    %23 = vector.shape_cast %20 : vector<8x8xf32> to vector<1x1x1x8x8xf32>
    tpu.vector_store %arg6[%c0_26, %c3, %c0_27, %c0_28, %c0_29], %23 {strides = array<i32>} : memref<1x4x1x8x8xf32, #tpu.memory_space<vmem>>, vector<1x1x1x8x8xf32>,
    return
  }
  func.func @transform_0(%arg0: i32, %arg1: i32, %arg2: i32) -> (i32, i32, i32, i32) {
    %c0_i32 = arith.constant 0 : i32
    %c0_i32_0 = arith.constant 0 : i32
    return %arg0, %arg1, %arg2, %c0_i32 : i32, i32, i32, i32
  }
  func.func @transform_1(%arg0: i32, %arg1: i32, %arg2: i32) -> (i32, i32) {
    %c0_i32 = arith.constant 0 : i32
    %c0_i32_0 = arith.constant 0 : i32
    %c0_i32_1 = arith.constant 0 : i32
    return %c0_i32, %c0_i32_0 : i32, i32
  }
  func.func @transform_2(%arg0: i32, %arg1: i32, %arg2: i32) -> (i32, i32) {
    %c0_i32 = arith.constant 0 : i32
    %c0_i32_0 = arith.constant 0 : i32
    %c0_i32_1 = arith.constant 0 : i32
    return %c0_i32, %c0_i32_0 : i32, i32
  }
  func.func @transform_3(%arg0: i32, %arg1: i32, %arg2: i32) -> (i32, i32, i32, i32, i32) {
    %c0_i32 = arith.constant 0 : i32
    %c0_i32_0 = arith.constant 0 : i32
    %c0_i32_1 = arith.constant 0 : i32
    return %arg0, %c0_i32, %arg1, %arg2, %c0_i32_0 : i32, i32, i32, i32, i32
  }
}

</mosaic_0001>

<bundles_post_ra>
// kernel: _lambda_.1
= control target key start
LH: loop header
LB: loop body
LE: loop exit
PB: predicated region body
PF: predicated region fallthrough
CT: control target
= control target key end

     0   :  { %s861_s12 = smov 0   ;;  %s863_s13 = smov 0   ;;  %s974_s0 = inlined_call_operand.vmem [shape: f32[2,4,8,32], index: 0, kind: input, shape index: {}]   ;;  %s975_s1 = inlined_call_operand.vmem [shape: f32[16,8], index: 1, kind: input, shape index: {}]   ;;  %s976_s2 = inlined_call_operand.vmem [shape: f32[16,8], index: 2, kind: input, shape index: {}]   ;;  %s977_s3 = inlined_call_operand.vmem [shape: f32[2,4,4,8,8], index: 3, kind: output, shape index: {}]  }
   0x1   :  { %s865_s14 = smov 0   ;;  %s867_s15 = smov 0  }
   0x2   :  { %s869_s16 = smov 0   ;;  %s871_s17 = smov 0  }
   0x3   :  { %s873_s18 = smov 0  }
   0x4 LB: > { %s28_s19 = sadd.s32 1, %s827_s16  ;;  %s32_s20 = sadd.s32 1, %s831_s17  ;;  %s835_s18 = sphi %s873_s18, %s13_s18   ;;  %s831_s17 = sphi %s871_s17, %s984_s17   ;;  %s827_s16 = sphi %s869_s16, %s983_s16   ;;  %s823_s15 = sphi %s867_s15, %s982_s15   ;;  %s819_s14 = sphi %s865_s14, %s981_s14   ;;  %s815_s13 = sphi %s863_s13, %s980_s13   ;;  %s811_s12 = sphi %s861_s12, %s979_s12  }
   0x5   : > { %p30_p0 = scmp.ge.s32.totalorder %s28_s19, 4  ;;  %s649_s21 = sadd.s32 4294967295, %s835_s18  }
   0x6   : > { %p125_p1 = scmp.ne.s32.totalorder %s815_s13, %s811_s12  ;;  %p126_p2 = scmp.eq.s32.totalorder %s649_s21, 7 }
   0x7   : > { %s986_s19 = smov (%p30_p0, %s28_s19), 0  ;;  %s988_s20 = smov (!%p30_p0, %s32_s20), %s831_s17 }
   0x8   : > { %s109_s22 = ssub.s32 %s827_s16, %s986_s19  ;;  %p34_p3 = scmp.ge.s32.totalorder %s988_s20, 2 }
   0x9   : > { %p653_p4 = scmp.ge.s32.totalorder %s835_s18, 1  ;;  %p907_p5 = por %p126_p2, %p125_p1 }
   0xa   : > { %p170_p6 = scmp.lt.s32.totalorder %s835_s18, 9  ;;  %s990_s20 = smov (%p34_p3, %s988_s20), 0 }
   0xb   : > { %s108_s24 = ssub.s32 %s831_s17, %s990_s20  ;;  %s115_s26 = sadd.s32 1, %s815_s13 }
   0xc   : > { %p171_p7 = pnand %p653_p4, %p170_p6  ;;  %s110_s25 = sor.u32 %s109_s22, %s108_s24 }
   0xd   : > { %p113_p8 = scmp.eq.s32.totalorder %s110_s25, 0  ;;  %p199_p9 = scmp.lt.s32.totalorder (!%p171_p7), %s823_s15, 1  ;;  %v217_v0 = vld [vmem:[%s975_s1] sm:$0xff] (!%p171_p7)  ;;  %v218_v1 = vld [vmem:[%s975_s1 + $0x8] sm:$0xff] (!%p171_p7)  ;;  %v837_v3 = vmov (!%p171_p7), 0.0|0.0   ;;  %vm838_vm0 = vmmov (!%p171_p7), 0  }
   0xe   : > { %174 = sbr.rel (%p171_p7) target bundleno = 370 (0x172), region = 32  ;;  %p201_p10 = scmp.lt.s32.totalorder (!%p171_p7), %s819_s14, 3  ;;  %v219_v2 = vld [vmem:[%s976_s2] sm:$0xff] (!%p171_p7)  ;;  %709 = vmatprep.subr.bf16.mxu0 (!%p171_p7), %v837_v3  ;;  %712 = vmatprep.subr.bf16.mxu1 (!%p171_p7), %v837_v3  ;;  %v710_v4 = vpack.c.bf16 (!%p171_p7), %v218_v1, %v217_v0  ;;  %v220_v5 = vld [vmem:[%s976_s2 + $0x8] sm:$0xff] (!%p171_p7)  ;;  %v839_v7 = vmov (!%p171_p7), 0.0   ;;  %vm221_vm1 = vcmask (!%p171_p7), 130048  }
   0xf   : > { %s918_s27 = scalar_select %p113_p8, %s815_s13, %s115_s26  }
  0x10   : > { %v713_v6 = vpack.c.bf16 (!%p171_p7), %v220_v5, %v219_v2  ;;  %685 = vmatprep.mubr.msk.f32.mxu0 (!%p171_p7), %vm838_vm0, %v839_v7  ;;  %692 = vmatprep.mubr.msk.f32.mxu1 (!%p171_p7), %vm838_vm0, %v839_v7  ;;  %s840_s28 = smov (!%p171_p7), 112   ;;  %s196_s29 = sand.u32 (!%p171_p7), 1, %s811_s12   ;;  %vm295_vm2 = vcmask (!%p171_p7), 64512  }
  0x11   : > { %711 = vmatpush3.bf16.msra.mxu0 (!%p171_p7), %v710_v4  ;;  %s654_s30 = sshll.u32 (!%p171_p7), %s196_s29, 5 }
  0x12   : > { %714 = vmatpush3.bf16.msra.mxu1 (!%p171_p7), %v713_v6  ;;  %715 = vmatprep.subr.bf16.mxu0 (!%p171_p7), %v837_v3  ;;  %s198_s4 = scalar_lea.vmem (!%p171_p7), [#allocation2], %s654_s30 }
  0x13   : > { %718 = vmatprep.subr.bf16.mxu1 (!%p171_p7), %v837_v3 }
  0x15   : > { %s200_s9 = scalar_select %p199_p9, %s823_s15, 1 }
  0x16   : > { %s202_s10 = scalar_select %p201_p10, %s819_s14, 3 }
  0x17   : > { %s655_s11 = sshll.u32 %s200_s9, 2  ;;  %s665_s12 = sshll.u32 (%p907_p5), %s823_s15, 4 }
  0x18   : > { %s207_s21 = sadd.s32 %s655_s11, %s202_s10  ;;  %s525_s5 = sadd.s32 (%p907_p5), %s819_s14, %s665_s12 }
  0x19   : > { %s656_s22 = sshll.u32 %s207_s21, 3  ;;  %s666_s6 = sshll.u32 (%p907_p5), %s525_s5, 3 }
  0x1a   : > { %s209_s26 = scalar_lea.vmem %s974_s0, %s656_s22  ;;  %s527_s9 = scalar_lea.vmem (%p907_p5), %s977_s3, %s666_s6 }
  0x1b   : > { %v210_v8 = vld [vmem:[%s209_s26] sm:$0xff] }
  0x1c   : > { %212 = vrot.lane.b32.xlu0 %v210_v8, %s840_s28 }
  0x8e   : > { %v213_v9 = vpop.permute.xlu0 %212 }
  0x8f   : > { %v215_v10 = vadd.f32 %v213_v9, %v210_v8  ;;  %v216_v11 = vsub.f32 %v210_v8, %v213_v9 }
  0x91   : > { %686 = vmatmul.mubr.msk.f32.vlgmr.msra.gmra.mrb[0].mxu0 %vm221_vm1, %v215_v10  ;;  %693 = vmatmul.mubr.msk.f32.vlgmr.msra.gmra.mrb[0].mxu1 %vm221_vm1, %v215_v10 }
  0x92   : > { %717 = vmatpush3.bf16.msra.mxu0 %v710_v4  ;;  %720 = vmatpush3.bf16.msra.mxu1 %v713_v6 }
  0x93   : > { %699 = vmatprep.mubr.msk.f32.mxu0 %vm838_vm0, %v839_v7  ;;  %706 = vmatprep.mubr.msk.f32.mxu1 %vm838_vm0, %v839_v7 }
  0x95   : > { %700 = vmatmul.mubr.msk.f32.vlgmr.msra.gmra.mrb[2].mxu0 %vm221_vm1, %v216_v11  ;;  %707 = vmatmul.mubr.msk.f32.vlgmr.msra.gmra.mrb[2].mxu1 %vm221_vm1, %v216_v11 }
 0x163   : > { %522 = sbr.rel (!%p907_p5) target bundleno = 370 (0x172), region = 36 }
 0x164   : > { %v291_v12 = vpop.f32.mrb[0].mxu0  ;;  %v363_v13 = vpop.f32.mrb[0].mxu1 }
 0x165   : > { %296 = vst.msk [vmem:[%s198_s4] sm:$0xff] %vm295_vm2, %v291_v12  ;;  %659 = vst.msk [vmem:[%s198_s4 + $0x8] sm:$0xff] %vm295_vm2, %v363_v13  ;;  %v687_v14 = vpop.f32.mrb[1].mxu0  ;;  %v694_v15 = vpop.f32.mrb[1].mxu1 }
 0x168   : > { %v438_v16 = vpop.f32.mrb[2].mxu0  ;;  %v510_v17 = vpop.f32.mrb[2].mxu1 }
 0x169   : > { %661 = vst.msk [vmem:[%s198_s4 + $0x10] sm:$0xff] %vm295_vm2, %v438_v16  ;;  %663 = vst.msk [vmem:[%s198_s4 + $0x18] sm:$0xff] %vm295_vm2, %v510_v17  ;;  %v701_v18 = vpop.f32.mrb[3].mxu0  ;;  %v708_v19 = vpop.f32.mrb[3].mxu1 }
 0x16c   : > { %v561_v20 = vld [vmem:[%s198_s4] sm:$0xff]  ;;  %v563_v21 = vld [vmem:[%s198_s4 + $0x8] sm:$0xff] }
 0x16d   : > { %562 = vst [vmem:[%s527_s9] sm:$0xff] %v561_v20  ;;  %564 = vst [vmem:[%s527_s9 + $0x20] sm:$0xff] %v563_v21 }
 0x170   : > { %v565_v22 = vld [vmem:[%s198_s4 + $0x10] sm:$0xff]  ;;  %v567_v23 = vld [vmem:[%s198_s4 + $0x18] sm:$0xff] }
 0x171   : > { %566 = vst [vmem:[%s527_s9 + $0x40] sm:$0xff] %v565_v22  ;;  %568 = vst [vmem:[%s527_s9 + $0x60] sm:$0xff] %v567_v23 }
 0x172 PF: > { %s13_s18 = sadd.s32 1, %s835_s18   ;;  %s979_s12 = smov %s815_s13 }
 0x173   : > { %p10_p11 = scmp.ge.s32.totalorder %s13_s18, 10   ;;  %s980_s13 = smov %s918_s27 }
 0x174   : > { %s981_s14 = smov %s827_s16  ;;  %s982_s15 = smov %s831_s17 }
 0x175   : > { %s983_s16 = smov %s986_s19  ;;  %s984_s17 = smov %s990_s20 }
 0x176   :  { %12 = sbr.rel (!%p10_p11) target bundleno = 4 (0x4), region = 103 }

</bundles_post_ra>
